<compile_context>
chip_gen: v7x
topology: tpu7x:2x2x1
jax: 0.10.0
libtpu: 0.0.40
codegen_flags: <defaults>
</compile_context>

<pallas_src>
import functools

import jax
import jax.numpy as jnp
from jax import lax
from jax.experimental import pallas as pl
from jax.experimental.pallas import tpu as pltpu

_LANE = 1024                          # preferred lane-dense row width (8 x 128)
_TARGET_TILE_BYTES = 4 * 1024 * 1024  # f32 working-set bytes per input tile
_MIN_PALLAS_ELEMENTS = 256 * 1024     # below this the pure-JAX path wins


def _cdiv(a, b):
    return -(-a // b)


def _round_up(x, m):
    return _cdiv(x, m) * m


# ---------------------------------------------------------------------------
# Elementwise GAN losses (f32 math, f32 accumulation)
# ---------------------------------------------------------------------------
def _elementwise_loss(x, mode, target, sign):
    if mode == "lsgan":
        d = x - target
        return d * d
    if mode == "vanilla":
        # BCEWithLogitsLoss with a constant target t:
        #   max(x, 0) - x*t + log1p(exp(-|x|))
        return jnp.maximum(x, 0.0) - x * target + jnp.log1p(jnp.exp(-jnp.abs(x)))
    if mode == "wgangp":
        return sign * x
    if mode == "nonsaturating":
        z = sign * x
        return jnp.maximum(z, 0.0) + jnp.log1p(jnp.exp(-jnp.abs(z)))
    raise ValueError(mode)


def _mask_ragged_rows(v, total_rows, tile_rows):
    """Zero out rows of the tile that lie past the end of the array."""
    if total_rows % tile_rows == 0:          # static: grid divides exactly
        return v
    remaining = total_rows - pl.program_id(0) * tile_rows
    rid = lax.broadcasted_iota(jnp.int32, v.shape, 0)
    return jnp.where(rid < remaining, v, 0.0)


# ---------------------------------------------------------------------------
# Kernels
# ---------------------------------------------------------------------------
def _tile_partial_kernel(x_ref, o_ref, *, mode, target, sign,
                         total_rows, tile_rows):
    """Per-tile (8, lane) partial sums of f(x) (global-mean modes)."""
    # TODO(synk): on v6e/v7x the exp/log1p math could run in bf16 (bf16 EUP
    # path); kept in f32 here so the same kernel is also safe on v5e.
    x = x_ref[...].astype(jnp.float32)
    v = _elementwise_loss(x, mode, target, sign)
    v = _mask_ragged_rows(v, total_rows, tile_rows)
    # Fold 8-row (sublane-tile aligned) groups: pure VPU vreg adds, no XLU
    # cross-lane reduce, lane-dense (8, lane) store.
    acc = v[0:8, :]
    for g in range(1, tile_rows // 8):
        acc = acc + v[g * 8:(g + 1) * 8, :]
    o_ref[...] = acc


def _row_partial_kernel(x_ref, o_ref, *, sign, total_rows, tile_rows,
                        fold_lanes):
    """Per-row partials of softplus(sign*x) (nonsaturating mode)."""
    x = x_ref[...].astype(jnp.float32)
    v = _elementwise_loss(x, "nonsaturating", 0.0, sign)
    v = _mask_ragged_rows(v, total_rows, tile_rows)
    lane_w = v.shape[1]
    if fold_lanes:
        # Fold 128-lane groups (pure VPU adds) -> (tile_rows, 128) partials.
        acc = v[:, 0:128]
        for k in range(1, lane_w // 128):
            acc = acc + v[:, k * 128:(k + 1) * 128]
        o_ref[...] = acc
    else:
        # Odd lane widths (only hit by small/unusual shapes): full row sum.
        o_ref[...] = jnp.sum(v, axis=1, keepdims=True)


# ---------------------------------------------------------------------------
# Pallas wrappers
# ---------------------------------------------------------------------------
def _choose_tile_rows(rows, lane_w):
    # Elementwise math runs in f32, so the f32 intermediates dominate the VMEM
    # working set regardless of input dtype -> size tiles by f32 bytes.
    t = max(8, (_TARGET_TILE_BYTES // (lane_w * 4)) // 8 * 8)
    if rows > 8:
        # Keep >= 2 grid steps so both v7x TensorCores (and DMA streams) get
        # work for small/medium slabs; no effect on v5e/v6e.
        t = min(t, _round_up(_cdiv(rows, 2), 8))
    return min(t, _round_up(rows, 8))


_COMPILER_PARAMS = pltpu.CompilerParams(
    dimension_semantics=("parallel",),
    vmem_limit_bytes=32 * 1024 * 1024,   # fits v7x's 64 MiB VMEM per TC
)


def _pallas_total_sum(view2d, mode, target, sign):
    rows, lane_w = view2d.shape
    tile_rows = _choose_tile_rows(rows, lane_w)
    num_tiles = _cdiv(rows, tile_rows)
    kern = functools.partial(_tile_partial_kernel, mode=mode, target=target,
                             sign=sign, total_rows=rows, tile_rows=tile_rows)
    partials = pl.pallas_call(
        kern,
        out_shape=jax.ShapeDtypeStruct((num_tiles * 8, lane_w), jnp.float32),
        grid=(num_tiles,),
        in_specs=[pl.BlockSpec((tile_rows, lane_w), lambda i: (i, 0))],
        out_specs=pl.BlockSpec((8, lane_w), lambda i: (i, 0)),
        compiler_params=_COMPILER_PARAMS,
    )(view2d)
    return jnp.sum(partials)            # tiny epilogue reduction in JAX


def _pallas_row_sums(view2d, sign):
    rows, lane_w = view2d.shape
    tile_rows = _choose_tile_rows(rows, lane_w)
    num_tiles = _cdiv(rows, tile_rows)
    fold = (lane_w % 128 == 0) and (lane_w >= 512)
    out_w = 128 if fold else 1
    kern = functools.partial(_row_partial_kernel, sign=sign, total_rows=rows,
                             tile_rows=tile_rows, fold_lanes=fold)
    partials = pl.pallas_call(
        kern,
        out_shape=jax.ShapeDtypeStruct((rows, out_w), jnp.float32),
        grid=(num_tiles,),
        in_specs=[pl.BlockSpec((tile_rows, lane_w), lambda i: (i, 0))],
        out_specs=pl.BlockSpec((tile_rows, out_w), lambda i: (i, 0)),
        compiler_params=_COMPILER_PARAMS,
    )(view2d)
    return jnp.sum(partials, axis=1)    # (rows,)


def _lane_dense_view(pred, per_batch):
    """Free (no-copy) contiguous reshape of `pred` to a lane-dense 2-D view.

    Returns (view2d, rows_per_batch_element) or None when no usable view
    exists (caller then falls back to the pure-JAX path).
    """
    if pred.ndim == 0 or pred.size == 0:
        return None
    n = int(pred.size)
    if per_batch:
        b = int(pred.shape[0])
        per = n // b
        if per % _LANE == 0:
            lane_w, rpg = _LANE, per // _LANE
        elif pred.ndim >= 2 and int(pred.shape[-1]) > 0:
            lane_w = int(pred.shape[-1])
            rpg = per // lane_w
        else:
            return None
        rows = b * rpg
    else:
        lane_w = _LANE if n % _LANE == 0 else int(pred.shape[-1])
        rows = n // lane_w
        rpg = None
    if lane_w * 8 * 4 > _TARGET_TILE_BYTES:
        # even a minimal 8-row block would blow the f32 working-set budget
        return None
    return pred.reshape(rows, lane_w), rpg


# ---------------------------------------------------------------------------
# Pure-JAX path (small inputs / shapes with no free lane-dense view)
# ---------------------------------------------------------------------------
def _jax_loss(mode, prediction, target, sign):
    x = prediction.astype(jnp.float32)
    if mode == "nonsaturating":
        b = x.shape[0] if x.ndim >= 1 else 1
        z = sign * x
        sp = jnp.maximum(z, 0.0) + jnp.log1p(jnp.exp(-jnp.abs(z)))
        return jnp.mean(sp.reshape(b, -1), axis=1)
    return jnp.mean(_elementwise_loss(x, mode, target, sign))


# ---------------------------------------------------------------------------
# Public module
# ---------------------------------------------------------------------------
class AdversarialLoss:
    """JAX/Pallas port of ganslate's AdversarialLoss forward pass."""

    def __init__(self, gan_mode, target_real_label=1.0, target_fake_label=0.0,
                 min_pallas_elements=_MIN_PALLAS_ELEMENTS):
        if gan_mode not in ("lsgan", "vanilla", "wgangp", "nonsaturating"):
            raise NotImplementedError(f"GAN mode {gan_mode} not implemented.")
        self.gan_mode = gan_mode
        self.real_label = float(target_real_label)
        self.fake_label = float(target_fake_label)
        self.min_pallas_elements = int(min_pallas_elements)

    def calculate_loss(self, prediction, target_is_real):
        mode = self.gan_mode
        target = self.real_label if target_is_real else self.fake_label
        sign = -1.0 if target_is_real else 1.0
        n = int(prediction.size)

        plan = None
        if n >= max(1, self.min_pallas_elements):
            plan = _lane_dense_view(prediction,
                                    per_batch=(mode == "nonsaturating"))
        if plan is None:
            # Small-input fallback: a single fused XLA reduction beats the
            # fixed pallas_call overhead for typical PatchGAN outputs.
            return _jax_loss(mode, prediction, target, sign)

        view2d, rows_per_group = plan
        if mode == "nonsaturating":
            b = int(prediction.shape[0])
            per = n // b
            row_sums = _pallas_row_sums(view2d, sign)
            return row_sums.reshape(b, rows_per_group).sum(axis=1) / per
        total = _pallas_total_sum(view2d, mode, target, sign)
        return total / n

    def __call__(self, prediction, target_is_real):
        if isinstance(prediction, dict):
            # TODO(synk): dict reduction is hard-coded to mean (ganslate default).
            losses = [self.calculate_loss(p, target_is_real)
                      for p in prediction.values()]
            return jnp.stack(losses).mean()
        return self.calculate_loss(prediction, target_is_real)


# ---------------------------------------------------------------------------
# Pure-JAX reference for in-script sanity checks
# ---------------------------------------------------------------------------
def _ref_loss(gan_mode, prediction, target_is_real, real=1.0, fake=0.0):
    p = prediction.astype(jnp.float32)
    if gan_mode == "lsgan":
        t = real if target_is_real else fake
        return jnp.mean((p - t) ** 2)
    if gan_mode == "vanilla":
        t = real if target_is_real else fake
        return jnp.mean(jnp.maximum(p, 0.0) - p * t
                        + jnp.log1p(jnp.exp(-jnp.abs(p))))
    if gan_mode == "wgangp":
        return -jnp.mean(p) if target_is_real else jnp.mean(p)
    if gan_mode == "nonsaturating":
        b = p.shape[0]
        z = -p if target_is_real else p
        sp = jnp.maximum(z, 0.0) + jnp.log1p(jnp.exp(-jnp.abs(z)))
        return jnp.mean(sp.reshape(b, -1), axis=1)
    raise ValueError(gan_mode)


if __name__ == "__main__":
    key = jax.random.PRNGKey(0)
    k1, k2, k3 = jax.random.split(key, 3)

    # Typical small PatchGAN-style discriminator outputs (NCHW).
    pred = jax.random.normal(k1, (2, 4, 16, 16), dtype=jnp.float32)
    pred2 = jax.random.normal(k2, (2, 1, 8, 8), dtype=jnp.float32)
    # Medium pixel-level discriminator output: big enough to take the Pallas
    # path with the default threshold (multi-tile grid, both TCs on v7x).
    pred_big = jax.random.normal(k3, (2, 3, 256, 256), dtype=jnp.float32)

    ok = True

    def check(name, got, want, atol=1e-4, rtol=1e-4):
        global ok
        got = jax.block_until_ready(got)
        if not jnp.allclose(got, want, atol=atol, rtol=rtol):
            ok = False
            print(f"MISMATCH {name}: {got} vs {want}")

    for mode in ("lsgan", "vanilla", "wgangp", "nonsaturating"):
        default_loss = AdversarialLoss(mode)                        # small -> JAX path
        forced_loss = AdversarialLoss(mode, min_pallas_elements=0)  # always Pallas
        for target_is_real in (True, False):
            check(f"{mode} small real={target_is_real}",
                  default_loss(pred, target_is_real),
                  _ref_loss(mode, pred, target_is_real))
            check(f"{mode} pallas real={target_is_real}",
                  forced_loss(pred, target_is_real),
                  _ref_loss(mode, pred, target_is_real))
            check(f"{mode} pallas odd-lane real={target_is_real}",
                  forced_loss(pred2, target_is_real),
                  _ref_loss(mode, pred2, target_is_real))
        check(f"{mode} pallas medium",
              default_loss(pred_big, True), _ref_loss(mode, pred_big, True))

    # Dict-of-predictions (multi-discriminator): each member its own pallas_call.
    for mode in ("lsgan", "nonsaturating"):
        forced_loss = AdversarialLoss(mode, min_pallas_elements=0)
        got = forced_loss({"D1": pred, "D2": pred2}, True)
        want = jnp.stack([_ref_loss(mode, pred, True),
                          _ref_loss(mode, pred2, True)]).mean()
        check(f"dict {mode}", got, want)

    # bf16 input: consumed in native dtype (half the HBM traffic), f32 math
    # and accumulation inside the kernel.
    pred_bf16 = pred_big.astype(jnp.bfloat16)
    got = AdversarialLoss("lsgan")(pred_bf16, False)
    check("bf16 lsgan", got, _ref_loss("lsgan", pred_bf16, False))

    if ok:
        print("KERNEL_OK")
</pallas_src>

<mosaic_0001>
module attributes {stable_mosaic.version = 11 : i64} {
  func.func @_tile_partial_kernel(%arg0: i32, %arg1: memref<8x1024xf32, #tpu.memory_space<vmem>>, %arg2: memref<8x1024xf32, #tpu.memory_space<vmem>>) attributes {dimension_semantics = [#tpu.dimension_semantics<parallel>], iteration_bounds = array<i64: 1>, scalar_prefetch = 0 : i64, scratch_operands = 0 : i64, tpu.core_type = #tpu.core_type<tc>, window_params = [{transform_indices = @transform_0, window_bounds = array<i64: 8, 1024>}, {transform_indices = @transform_1, window_bounds = array<i64: 8, 1024>}]} {
    %c0 = arith.constant 0 : index
    %c0_0 = arith.constant 0 : index
    %0 = vector.load %arg1[%c0, %c0_0] : memref<8x1024xf32, #tpu.memory_space<vmem>>, vector<8x1024xf32>
    %cst = arith.constant 1.000000e+00 : f32
    %1 = vector.broadcast %cst : f32 to vector<8x1024xf32>
    %2 = arith.subf %0, %1 : vector<8x1024xf32>
    %3 = arith.mulf %2, %2 : vector<8x1024xf32>
    %c8_i32 = arith.constant 8 : i32
    %4 = arith.muli %arg0, %c8_i32 : i32
    %c2_i32 = arith.constant 2 : i32
    %5 = arith.subi %c2_i32, %4 : i32
    %6 = tpu.iota {dimensions = array<i32: 0>} : vector<8x1024xi32>
    %7 = vector.broadcast %5 : i32 to vector<8x1024xi32>
    %8 = arith.cmpi slt, %6, %7 : vector<8x1024xi32>
    %cst_1 = arith.constant 0.000000e+00 : f32
    %9 = vector.broadcast %cst_1 : f32 to vector<8x1024xf32>
    %10 = arith.select %8, %3, %9 : vector<8x1024xi1>, vector<8x1024xf32>
    %c0_2 = arith.constant 0 : index
    %c0_3 = arith.constant 0 : index
    %11 = vector.load %arg2[%c0_2, %c0_3] : memref<8x1024xf32, #tpu.memory_space<vmem>>, vector<8x1024xf32>
    tpu.vector_store %arg2[%c0_2, %c0_3], %10 {strides = array<i32>} : memref<8x1024xf32, #tpu.memory_space<vmem>>, vector<8x1024xf32>,
    return
  }
  func.func @transform_0(%arg0: i32) -> (i32, i32) {
    %c0_i32 = arith.constant 0 : i32
    %c0_i32_0 = arith.constant 0 : i32
    return %arg0, %c0_i32 : i32, i32
  }
  func.func @transform_1(%arg0: i32) -> (i32, i32) {
    %c0_i32 = arith.constant 0 : i32
    %c0_i32_0 = arith.constant 0 : i32
    return %arg0, %c0_i32 : i32, i32
  }
}

</mosaic_0001>

<bundles_post_ra>
// kernel: tpu_custom_call.1
= control target key start
LH: loop header
LB: loop body
LE: loop exit
PB: predicated region body
PF: predicated region fallthrough
CT: control target
= control target key end

     0   :  { %6 = vsyncpa [#allocation3], 0  ;;  %s292_s0 = inlined_call_operand.hbm [shape: f32[2,1024], index: 0, kind: input, shape index: {}]   ;;  %s293_s1 = inlined_call_operand.hbm [shape: f32[8,1024], index: 1, kind: output, shape index: {}]  }
   0x1   :  { %7 = vsyncpa [#allocation4], 0 }
   0x2   :  { %12 = vsyncadd [#allocation3], 768  ;;  %s233_s6 = smov [#allocation2]   ;;  %s185_s10 = scalar_lea.hbm %s292_s0, 256 }
   0x3   :  { %s13_s7 = sshll.u32 %s233_s6, 4  ;;  %p186_p0 = scmp.ne.s32.totalorder %s292_s0, %s185_s10  ;;  %s14_s7 = int_to_ptr.vmem [resolvable:$true] %s13_s7 }
   0x4   :  { %p189_p1 = scmp.lt.u32.totalorder %s185_s10, %s292_s0 }
   0x6   :  { %p191_p2 = pnand %p189_p1, %p186_p0 }
   0x8   :  { %194 = shalt.err (!%p191_p2)
}
   0x9   :  { %s195_s15 = scalar_lea.vmem %s14_s7, 256  ;;  %s199_s16 = scalar_lea.vmem %s14_s7, 1024 }
   0xa   :  { %p196_p3 = scmp.ne.s32.totalorder %s14_s7, %s195_s15  ;;  %p200_p4 = scmp.lt.s32.totalorder %s14_s7, %s14_s7 }
   0xb   :  { %p201_p5 = scmp.lt.s32.totalorder %s199_s16, %s195_s15 }
   0xd   :  { %p202_p6 = por %p201_p5, %p200_p4 }
   0xf   :  { %p203_p7 = pnand %p202_p6, %p196_p3 }
  0x11   :  { %206 = shalt.err (!%p203_p7)
}
  0x12   :  { %s234_s17 = smov 256   ;;  %s235_s18 = smov 16  }
  0x13   :  { %19 = dma.hbm_to_vmem [thread:$0]  %s292_s0, 256, %s14_s7, [#allocation3], %s234_s17, %s234_s17, %s235_s18  }
  0x14   :  { %229 = dma.done.wait [#allocation3], 1024  }
  0x15   :  { %230 = vsyncadd [#allocation3], 4294966272  ;;  %v49_v0 = vlaneseq  ;;  %v236_v1 = vmov 1983009808   ;;  %v23_v5 = vld [vmem:[#allocation2] sm:$0xff]  ;;  %v25_v6 = vld [vmem:[#allocation2 + $0x10] sm:$0xff] }
  0x16   :  { %v66_v2 = vunpack.c.l.s4 %v236_v1  ;;  %v27_v7 = vld [vmem:[#allocation2 + $0x20] sm:$0xff]  ;;  %v29_v8 = vld [vmem:[#allocation2 + $0x30] sm:$0xff]  ;;  %v172_v9 = vadd.f32 -1.0, %v23_v5  ;;  %v174_v10 = vadd.f32 -1.0, %v25_v6  ;;  %v24_v12 = vld [vmem:[#allocation2 + $0x8] sm:$0xff]  ;;  %s237_s0 = smov [#allocation5]  }
  0x17   :  { %v260_v3 = vshrl.u32 %v49_v0, 7  ;;  %v176_v11 = vadd.f32 -1.0, %v27_v7  ;;  %v26_v13 = vld [vmem:[#allocation2 + $0x18] sm:$0xff]  ;;  %v178_v14 = vadd.f32 -1.0, %v29_v8  ;;  %v28_v16 = vld [vmem:[#allocation2 + $0x28] sm:$0xff]  ;;  %v173_v18 = vadd.f32 -1.0, %v24_v12 }
  0x18   :  { %v67_v4 = vunpack.c.0.s8 %v66_v2  ;;  %v30_v17 = vld [vmem:[#allocation2 + $0x38] sm:$0xff]  ;;  %v175_v19 = vadd.f32 -1.0, %v26_v13  ;;  %v39_v20 = vmul.f32 %v172_v9, %v172_v9  ;;  %v41_v21 = vmul.f32 %v174_v10, %v174_v10  ;;  %s163_s21 = sshll.u32 %s237_s0, 4  ;;  %s164_s21 = int_to_ptr.vmem [resolvable:$true] %s163_s21 }
  0x19   :  { %v43_v22 = vmul.f32 %v176_v11, %v176_v11  ;;  %v177_v23 = vadd.f32 -1.0, %v28_v16  ;;  %v45_v24 = vmul.f32 %v178_v14, %v178_v14  ;;  %v179_v25 = vadd.f32 -1.0, %v30_v17  ;;  %s207_s22 = scalar_lea.vmem %s164_s21, 1024  ;;  %p212_p9 = scmp.lt.s32.totalorder %s164_s21, %s164_s21 }
  0x1a   :  { %v70_v15 = vsub.s32 %v67_v4, %v260_v3  ;;  %v40_v26 = vmul.f32 %v173_v18, %v173_v18  ;;  %v42_v27 = vmul.f32 %v175_v19, %v175_v19  ;;  %v61_v28 = vcombine.low %v39_v20, %v41_v21  ;;  %p208_p8 = scmp.ne.s32.totalorder %s164_s21, %s207_s22  ;;  %p213_p10 = scmp.lt.s32.totalorder %s207_s22, %s207_s22 }
  0x1b   :  { %v62_v29 = vcombine.high %v39_v20, %v41_v21  ;;  %v44_v30 = vmul.f32 %v177_v23, %v177_v23  ;;  %v63_v31 = vcombine.low %v43_v22, %v45_v24  ;;  %v64_v32 = vcombine.high %v43_v22, %v45_v24 }
  0x1c   :  { %v46_v33 = vmul.f32 %v179_v25, %v179_v25  ;;  %v97_v34 = vcombine.low %v40_v26, %v42_v27  ;;  %v71_v35 = vrot.slane %v61_v28, %v70_v15  ;;  %v98_v37 = vcombine.high %v40_v26, %v42_v27  ;;  %p214_p11 = por %p213_p10, %p212_p9 }
  0x1d   :  { %v78_v36 = vrot.slane %v62_v29, %v70_v15  ;;  %v85_v38 = vrot.slane %v63_v31, %v70_v15  ;;  %v92_v39 = vrot.slane %v64_v32, %v70_v15  ;;  %vm52_vm0 = vcmp.lt.s32.totalorder %v260_v3, 2 }
  0x1e   :  { %v99_v40 = vcombine.low %v44_v30, %v46_v33  ;;  %v107_v41 = vrot.slane %v97_v34, %v70_v15  ;;  %v100_v42 = vcombine.high %v44_v30, %v46_v33  ;;  %v114_v43 = vrot.slane %v98_v37, %v70_v15  ;;  %p215_p12 = pnand %p214_p11, %p208_p8 }
  0x1f   :  { %v93_v44 = vcombine.low %v71_v35, %v85_v38  ;;  %v94_v45 = vcombine.high %v71_v35, %v85_v38  ;;  %v95_v46 = vcombine.low %v78_v36, %v92_v39  ;;  %v96_v47 = vcombine.high %v78_v36, %v92_v39 }
  0x20   :  { %v121_v48 = vrot.slane %v99_v40, %v70_v15  ;;  %v128_v49 = vrot.slane %v100_v42, %v70_v15 }
  0x21   :  { %v141_v50 = vsel %vm52_vm0, %v93_v44, 0.0  ;;  %v142_v51 = vsel %vm52_vm0, %v94_v45, 0.0  ;;  %v143_v52 = vsel %vm52_vm0, %v95_v46, 0.0  ;;  %v144_v53 = vsel %vm52_vm0, %v96_v47, 0.0 }
  0x22   :  { %149 = vst [vmem:[#allocation5] sm:$0xff] %v141_v50  ;;  %150 = vst [vmem:[#allocation5 + $0x8] sm:$0xff] %v142_v51  ;;  %v129_v54 = vcombine.low %v107_v41, %v121_v48  ;;  %v130_v55 = vcombine.high %v107_v41, %v121_v48  ;;  %v131_v56 = vcombine.low %v114_v43, %v128_v49 }
  0x23   :  { %151 = vst [vmem:[#allocation5 + $0x10] sm:$0xff] %v143_v52  ;;  %152 = vst [vmem:[#allocation5 + $0x18] sm:$0xff] %v144_v53  ;;  %v132_v57 = vcombine.high %v114_v43, %v128_v49 }
  0x24   :  { %v145_v58 = vsel %vm52_vm0, %v129_v54, 0.0  ;;  %v146_v59 = vsel %vm52_vm0, %v130_v55, 0.0  ;;  %v147_v60 = vsel %vm52_vm0, %v131_v56, 0.0 }
  0x25   :  { %v148_v61 = vsel %vm52_vm0, %v132_v57, 0.0  ;;  %153 = vst [vmem:[#allocation5 + $0x20] sm:$0xff] %v145_v58  ;;  %154 = vst [vmem:[#allocation5 + $0x28] sm:$0xff] %v146_v59 }
  0x26   :  { %155 = vst [vmem:[#allocation5 + $0x30] sm:$0xff] %v147_v60  ;;  %156 = vst [vmem:[#allocation5 + $0x38] sm:$0xff] %v148_v61 }
  0x27   :  { %218 = shalt.err (!%p215_p12)
}
  0x28   :  { %s219_s25 = scalar_lea.hbm %s293_s1, 1024 }
  0x29   :  { %p220_p13 = scmp.ne.s32.totalorder %s293_s1, %s219_s25  ;;  %p223_p0 = scmp.lt.u32.totalorder %s219_s25, %s293_s1 }
  0x2b   :  { %p225_p1 = pnand %p223_p0, %p220_p13 }
  0x2d   :  { %228 = shalt.err (!%p225_p1)
}
  0x2e   :  { %166 = dma.vmem_to_hbm [thread:$0]  %s164_s21, 1024, %s293_s1, [#allocation4]  }
  0x2f   :  { %231 = dma.done.wait [#allocation4], 1024  }
  0x30   :  { %232 = vsyncadd [#allocation4], 4294966272 }
  0x31   :  { %170 = vsyncpa [#allocation3], 1 }
  0x32   :  { %171 = vsyncpa [#allocation4], 1 }

</bundles_post_ra>
